<compile_context>
chip_gen: v7x
topology: tpu7x:2x2x1
jax: 0.10.0
libtpu: 0.0.40
codegen_flags: <defaults>
</compile_context>

<pallas_src>
import functools

import jax
import jax.numpy as jnp
from jax.experimental import pallas as pl
from jax.experimental.pallas import tpu as pltpu

IN_DIM = 784
HID_DIM = 30
OUT_DIM = 10
HID_PAD = 128   # hidden dim padded to lane width
OUT_PAD = 128   # output dim padded to lane width


def _round_up(n, m):
    return ((n + m - 1) // m) * m


def _bf16_act_default():
    # bf16 VPU/EUP exist on v6e and later; keep f32 activations on v5e/v4/...
    try:
        kind = jax.devices()[0].device_kind.lower()
    except Exception:
        return False
    return not any(t in kind for t in ("v2", "v3", "v4", "v5"))


def mnist_kernel(x_ref, w1_ref, b1_ref, w2_ref, b2_ref, o_ref, *, bf16_act):
    # fc1: cast the f32 x tile to bf16 in-register (MXU-native), f32 accumulate.
    x = x_ref[...].astype(jnp.bfloat16)
    h = jnp.dot(x, w1_ref[...], preferred_element_type=jnp.float32) + b1_ref[...]
    if bf16_act:
        # v6e/v7x: bf16 VPU/EUP -> half the sigmoid work; fc2 consumes bf16 anyway.
        h = jax.nn.sigmoid(h.astype(jnp.bfloat16))
    else:
        # v5e and older: no bf16 VPU/EUP; keep the nonlinearity in f32.
        h = jax.nn.sigmoid(h).astype(jnp.bfloat16)
    # fc2: padded rows (30..127) of w2 are exactly zero, so the sigmoid(0)=0.5
    # padded lanes of h contribute nothing to the real output columns.
    o = jnp.dot(h, w2_ref[...], preferred_element_type=jnp.float32) + b2_ref[...]
    o_ref[...] = jax.nn.sigmoid(o).astype(o_ref.dtype)   # lane-dense bf16 store


def pad_params(w1, b1, w2, b2):
    """One-time prep: zero-pad feature dims to 128 lanes, cast weights to bf16."""
    w1p = jnp.zeros((IN_DIM, HID_PAD), jnp.bfloat16).at[:, :HID_DIM].set(
        w1.astype(jnp.bfloat16))
    b1p = jnp.zeros((1, HID_PAD), jnp.float32).at[:, :HID_DIM].set(
        b1.reshape(1, HID_DIM).astype(jnp.float32))
    # Padded *rows* of w2 must stay exactly zero (correctness; see kernel).
    w2p = jnp.zeros((HID_PAD, OUT_PAD), jnp.bfloat16).at[:HID_DIM, :OUT_DIM].set(
        w2.astype(jnp.bfloat16))
    b2p = jnp.zeros((1, OUT_PAD), jnp.float32).at[:, :OUT_DIM].set(
        b2.reshape(1, OUT_DIM).astype(jnp.float32))
    return w1p, b1p, w2p, b2p


@functools.partial(jax.jit, static_argnames=("block_batch", "bf16_act"))
def mnist_forward(x, w1p, b1p, w2p, b2p, *, block_batch=1024, bf16_act=False):
    """x: [B, 784] float32.  Returns [B, 10] float32 (sigmoid outputs)."""
    B = x.shape[0]
    # Batch tile: large (amortizes per-grid-step overhead), multiple of 16
    # (bf16 sublane packing), capped at ceil(B/2) so the "parallel" grid axis
    # keeps >= 2 steps for v7x's two TensorCores whenever B allows it.
    TB = min(block_batch, _round_up(pl.cdiv(B, 2), 16))
    TB = max(16, _round_up(TB, 16))
    grid = pl.cdiv(B, TB)
    Bp = grid * TB   # pad output rows so output blocks are exact (no masked stores)

    # Pipeline VMEM footprint (Pallas double-buffers every operand).
    vmem_bytes = 2 * (
        TB * IN_DIM * 4                          # x tile (f32)
        + IN_DIM * HID_PAD * 2 + HID_PAD * 4     # w1 (bf16) + b1 (f32)
        + HID_PAD * OUT_PAD * 2 + OUT_PAD * 4    # w2 (bf16) + b2 (f32)
        + TB * OUT_PAD * 2                       # out tile (bf16)
    )
    # 2x slack for in-kernel temporaries; clamp to a range safe on v5e/v6e/v7x.
    vmem_limit = int(min(32 * 1024 * 1024, max(16 * 1024 * 1024, 2 * vmem_bytes)))

    out_padded = pl.pallas_call(
        functools.partial(mnist_kernel, bf16_act=bf16_act),
        out_shape=jax.ShapeDtypeStruct((Bp, OUT_PAD), jnp.bfloat16),
        grid=(grid,),
        in_specs=[
            pl.BlockSpec((TB, IN_DIM), lambda i: (i, 0)),        # x: batch-tiled (f32)
            pl.BlockSpec((IN_DIM, HID_PAD), lambda i: (0, 0)),   # weights/biases use a
            pl.BlockSpec((1, HID_PAD), lambda i: (0, 0)),        #   constant block index
            pl.BlockSpec((HID_PAD, OUT_PAD), lambda i: (0, 0)),  #   -> DMA'd once, kept
            pl.BlockSpec((1, OUT_PAD), lambda i: (0, 0)),        #   resident in VMEM
        ],
        out_specs=pl.BlockSpec((TB, OUT_PAD), lambda i: (i, 0)),
        compiler_params=pltpu.CompilerParams(
            dimension_semantics=("parallel",),   # shard batch tiles across v7x's 2 TCs
            vmem_limit_bytes=vmem_limit,
        ),
    )(x, w1p, b1p, w2p, b2p)

    # TODO(synk): for peak perf, fuse the downstream consumer (loss / argmax) and
    # keep the padded bf16 output instead of slicing + casting here.
    return out_padded[:B, :OUT_DIM].astype(jnp.float32)


def init_params(key):
    # Deterministic synthetic init mimicking PyTorch Linear's
    # U(-1/sqrt(fan_in), 1/sqrt(fan_in)); weights stored as [in, out].
    k1, k2, k3, k4 = jax.random.split(key, 4)
    lim1 = 1.0 / jnp.sqrt(784.0)
    lim2 = 1.0 / jnp.sqrt(30.0)
    w1 = jax.random.uniform(k1, (IN_DIM, HID_DIM), jnp.float32, -lim1, lim1)
    b1 = jax.random.uniform(k2, (1, HID_DIM), jnp.float32, -lim1, lim1)
    w2 = jax.random.uniform(k3, (HID_DIM, OUT_DIM), jnp.float32, -lim2, lim2)
    b2 = jax.random.uniform(k4, (1, OUT_DIM), jnp.float32, -lim2, lim2)
    return w1, b1, w2, b2


if __name__ == "__main__":
    key = jax.random.PRNGKey(0)
    k_x, k_p = jax.random.split(key)
    batch = 8
    x = jax.random.normal(k_x, (batch, IN_DIM), jnp.float32)
    w1, b1, w2, b2 = init_params(k_p)

    w1p, b1p, w2p, b2p = pad_params(w1, b1, w2, b2)   # one-time weight prep
    out = mnist_forward(x, w1p, b1p, w2p, b2p, bf16_act=_bf16_act_default())
    jax.block_until_ready(out)
    assert out.shape == (batch, OUT_DIM)
    assert bool(jnp.all(jnp.isfinite(out)))

    # Reference: pure-f32 module semantics.  Kernel differs only by bf16
    # rounding of inputs/weights/output (sigmoid outputs in [0,1] -> the
    # absolute error stays well under the tolerance).
    ref = jax.nn.sigmoid(jax.nn.sigmoid(x @ w1 + b1) @ w2 + b2)
    assert jnp.allclose(out, ref, atol=2.5e-2), "mismatch vs f32 reference"

    print("KERNEL_OK")
</pallas_src>

<mosaic_0001>
module attributes {stable_mosaic.version = 11 : i64} {
  func.func @mnist_kernel(%arg0: i32, %arg1: memref<16x784xf32, #tpu.memory_space<vmem>>, %arg2: memref<784x128xbf16, #tpu.memory_space<vmem>>, %arg3: memref<1x128xf32, #tpu.memory_space<vmem>>, %arg4: memref<128x128xbf16, #tpu.memory_space<vmem>>, %arg5: memref<1x128xf32, #tpu.memory_space<vmem>>, %arg6: memref<16x128xbf16, #tpu.memory_space<vmem>>) attributes {dimension_semantics = [#tpu.dimension_semantics<parallel>], iteration_bounds = array<i64: 1>, scalar_prefetch = 0 : i64, scratch_operands = 0 : i64, tpu.core_type = #tpu.core_type<tc>, window_params = [{transform_indices = @transform_0, window_bounds = array<i64: 16, 784>}, {pipeline_mode = #tpu.pipeline_mode<synchronous>, transform_indices = @transform_1, window_bounds = array<i64: 784, 128>}, {pipeline_mode = #tpu.pipeline_mode<synchronous>, transform_indices = @transform_2, window_bounds = array<i64: 1, 128>}, {pipeline_mode = #tpu.pipeline_mode<synchronous>, transform_indices = @transform_3, window_bounds = array<i64: 128, 128>}, {pipeline_mode = #tpu.pipeline_mode<synchronous>, transform_indices = @transform_4, window_bounds = array<i64: 1, 128>}, {transform_indices = @transform_5, window_bounds = array<i64: 16, 128>}]} {
    %c0 = arith.constant 0 : index
    %c0_0 = arith.constant 0 : index
    %0 = vector.load %arg1[%c0, %c0_0] : memref<16x784xf32, #tpu.memory_space<vmem>>, vector<16x784xf32>
    %1 = arith.truncf %0 : vector<16x784xf32> to vector<16x784xbf16>
    %c0_1 = arith.constant 0 : index
    %c0_2 = arith.constant 0 : index
    %2 = vector.load %arg2[%c0_1, %c0_2] : memref<784x128xbf16, #tpu.memory_space<vmem>>, vector<784x128xbf16>
    %cst = arith.constant dense<0.000000e+00> : vector<16x128xf32>
    %3 = tpu.matmul %1, %2, %cst {dimension_numbers = #tpu.dot_dimension_numbers<[1], [0], [0], [1], [0, 0, 1, 1], [], []>} : vector<16x784xbf16>, vector<784x128xbf16>, vector<16x128xf32> -> vector<16x128xf32>
    %c0_3 = arith.constant 0 : index
    %c0_4 = arith.constant 0 : index
    %4 = vector.load %arg3[%c0_3, %c0_4] : memref<1x128xf32, #tpu.memory_space<vmem>>, vector<1x128xf32>
    %5 = vector.broadcast %4 : vector<1x128xf32> to vector<16x128xf32>
    %6 = arith.addf %3, %5 : vector<16x128xf32>
    %7 = arith.truncf %6 : vector<16x128xf32> to vector<16x128xbf16>
    %8 = arith.negf %7 : vector<16x128xbf16>
    %9 = math.exp %8 : vector<16x128xbf16>
    %cst_5 = arith.constant 1.000000e+00 : bf16
    %10 = vector.broadcast %cst_5 : bf16 to vector<16x128xbf16>
    %11 = arith.addf %10, %9 : vector<16x128xbf16>
    %12 = arith.divf %10, %11 : vector<16x128xbf16>
    %c0_6 = arith.constant 0 : index
    %c0_7 = arith.constant 0 : index
    %13 = vector.load %arg4[%c0_6, %c0_7] : memref<128x128xbf16, #tpu.memory_space<vmem>>, vector<128x128xbf16>
    %cst_8 = arith.constant dense<0.000000e+00> : vector<16x128xf32>
    %14 = tpu.matmul %12, %13, %cst_8 {dimension_numbers = #tpu.dot_dimension_numbers<[1], [0], [0], [1], [0, 0, 1, 1], [], []>} : vector<16x128xbf16>, vector<128x128xbf16>, vector<16x128xf32> -> vector<16x128xf32>
    %c0_9 = arith.constant 0 : index
    %c0_10 = arith.constant 0 : index
    %15 = vector.load %arg5[%c0_9, %c0_10] : memref<1x128xf32, #tpu.memory_space<vmem>>, vector<1x128xf32>
    %16 = vector.broadcast %15 : vector<1x128xf32> to vector<16x128xf32>
    %17 = arith.addf %14, %16 : vector<16x128xf32>
    %18 = arith.negf %17 : vector<16x128xf32>
    %19 = math.exp %18 : vector<16x128xf32>
    %cst_11 = arith.constant 1.000000e+00 : f32
    %20 = vector.broadcast %cst_11 : f32 to vector<16x128xf32>
    %21 = arith.addf %20, %19 : vector<16x128xf32>
    %22 = arith.divf %20, %21 : vector<16x128xf32>
    %23 = arith.truncf %22 : vector<16x128xf32> to vector<16x128xbf16>
    %c0_12 = arith.constant 0 : index
    %c0_13 = arith.constant 0 : index
    %24 = vector.load %arg6[%c0_12, %c0_13] : memref<16x128xbf16, #tpu.memory_space<vmem>>, vector<16x128xbf16>
    tpu.vector_store %arg6[%c0_12, %c0_13], %23 {strides = array<i32>} : memref<16x128xbf16, #tpu.memory_space<vmem>>, vector<16x128xbf16>,
    return
  }
  func.func @transform_0(%arg0: i32) -> (i32, i32) {
    %c0_i32 = arith.constant 0 : i32
    %c0_i32_0 = arith.constant 0 : i32
    return %arg0, %c0_i32 : i32, i32
  }
  func.func @transform_1(%arg0: i32) -> (i32, i32) {
    %c0_i32 = arith.constant 0 : i32
    %c0_i32_0 = arith.constant 0 : i32
    %c0_i32_1 = arith.constant 0 : i32
    return %c0_i32, %c0_i32_0 : i32, i32
  }
  func.func @transform_2(%arg0: i32) -> (i32, i32) {
    %c0_i32 = arith.constant 0 : i32
    %c0_i32_0 = arith.constant 0 : i32
    %c0_i32_1 = arith.constant 0 : i32
    return %c0_i32, %c0_i32_0 : i32, i32
  }
  func.func @transform_3(%arg0: i32) -> (i32, i32) {
    %c0_i32 = arith.constant 0 : i32
    %c0_i32_0 = arith.constant 0 : i32
    %c0_i32_1 = arith.constant 0 : i32
    return %c0_i32, %c0_i32_0 : i32, i32
  }
  func.func @transform_4(%arg0: i32) -> (i32, i32) {
    %c0_i32 = arith.constant 0 : i32
    %c0_i32_0 = arith.constant 0 : i32
    %c0_i32_1 = arith.constant 0 : i32
    return %c0_i32, %c0_i32_0 : i32, i32
  }
  func.func @transform_5(%arg0: i32) -> (i32, i32) {
    %c0_i32 = arith.constant 0 : i32
    %c0_i32_0 = arith.constant 0 : i32
    return %arg0, %c0_i32 : i32, i32
  }
}

</mosaic_0001>

<bundles_post_ra>
// kernel: mnist_forward.1
= control target key start
LH: loop header
LB: loop body
LE: loop exit
PB: predicated region body
PF: predicated region fallthrough
CT: control target
= control target key end

     0   :  { %10 = vsyncpa [#allocation3], 0  ;;  %s1225_s0 = inlined_call_operand.hbm [shape: f32[8,784], index: 0, kind: input, shape index: {}]   ;;  %s1226_s1 = inlined_call_operand.hbm [shape: bf16[784,128], index: 1, kind: input, shape index: {}]   ;;  %s1227_s2 = inlined_call_operand.vmem [shape: f32[1,128], index: 2, kind: input, shape index: {}]   ;;  %s1228_s3 = inlined_call_operand.hbm [shape: bf16[128,128], index: 3, kind: input, shape index: {}]   ;;  %s1229_s4 = inlined_call_operand.vmem [shape: f32[1,128], index: 4, kind: input, shape index: {}]   ;;  %s1230_s5 = inlined_call_operand.vmem [shape: bf16[16,128], index: 5, kind: output, shape index: {}]  }
   0x1   :  { %11 = vsyncpa [#allocation5], 0 }
   0x2   :  { %16 = vsyncadd [#allocation3], 896  ;;  %s1122_s18 = smov [#allocation4]   ;;  %s1052_s22 = scalar_lea.hbm %s1226_s1, 6272 }
   0x3   :  { %s29_s19 = sshll.u32 %s1122_s18, 4  ;;  %p1053_p0 = scmp.ne.s32.totalorder %s1226_s1, %s1052_s22  ;;  %s30_s19 = int_to_ptr.vmem [resolvable:$true] %s29_s19 }
   0x4   :  { %p1056_p1 = scmp.lt.u32.totalorder %s1052_s22, %s1226_s1 }
   0x6   :  { %p1058_p2 = pnand %p1056_p1, %p1053_p0 }
   0x8   :  { %1061 = shalt.err (!%p1058_p2)
}
   0x9   :  { %s1062_s27 = scalar_lea.vmem %s30_s19, 6272  ;;  %p1067_p4 = scmp.lt.s32.totalorder %s30_s19, %s30_s19 }
   0xa   :  { %p1063_p3 = scmp.ne.s32.totalorder %s30_s19, %s1062_s27  ;;  %p1068_p5 = scmp.lt.s32.totalorder %s1062_s27, %s1062_s27 }
   0xc   :  { %p1069_p6 = por %p1068_p5, %p1067_p4 }
   0xe   :  { %p1070_p7 = pnand %p1069_p6, %p1063_p3 }
  0x10   :  { %1073 = shalt.err (!%p1070_p7)
}
  0x11   :  { %s1123_s28 = smov 64   ;;  %s1124_s29 = smov 4  }
  0x12   :  { %35 = dma.hbm_to_vmem [thread:$0]  %s1226_s1, 6272, %s30_s19, [#allocation5], %s1123_s28, %s1123_s28, %s1124_s29  }
  0x13   :  { %s1125_s7 = smov [#allocation2]   ;;  %s1074_s11 = scalar_lea.hbm %s1225_s0, 896 }
  0x14   :  { %s17_s8 = sshll.u32 %s1125_s7, 4  ;;  %p1075_p8 = scmp.ne.s32.totalorder %s1225_s0, %s1074_s11  ;;  %s18_s8 = int_to_ptr.vmem [resolvable:$true] %s17_s8 }
  0x15   :  { %p1078_p9 = scmp.lt.u32.totalorder %s1074_s11, %s1225_s0 }
  0x17   :  { %p1080_p10 = pnand %p1078_p9, %p1075_p8 }
  0x19   :  { %1083 = shalt.err (!%p1080_p10)
}
  0x1a   :  { %s1084_s16 = scalar_lea.vmem %s18_s8, 896  ;;  %s1088_s1 = scalar_lea.vmem %s18_s8, 1792 }
  0x1b   :  { %p1085_p11 = scmp.ne.s32.totalorder %s18_s8, %s1084_s16  ;;  %p1089_p12 = scmp.lt.s32.totalorder %s18_s8, %s18_s8 }
  0x1c   :  { %p1090_p13 = scmp.lt.s32.totalorder %s1088_s1, %s1084_s16 }
  0x1e   :  { %p1091_p0 = por %p1090_p13, %p1089_p12 }
  0x20   :  { %p1092_p1 = pnand %p1091_p0, %p1085_p11 }
  0x22   :  { %1095 = shalt.err (!%p1092_p1)
}
  0x23   :  { %s1126_s17 = smov 896   ;;  %s1127_s18 = smov 56  }
  0x24   :  { %23 = dma.hbm_to_vmem [thread:$0]  %s1225_s0, 896, %s18_s8, [#allocation3], %s1126_s17, %s1126_s17, %s1127_s18  }
  0x25   :  { %s1128_s21 = smov [#allocation6]   ;;  %s1096_s25 = scalar_lea.hbm %s1228_s3, 1024 }
  0x26   :  { %s43_s22 = sshll.u32 %s1128_s21, 4  ;;  %p1097_p2 = scmp.ne.s32.totalorder %s1228_s3, %s1096_s25  ;;  %s44_s22 = int_to_ptr.vmem [resolvable:$true] %s43_s22 }
  0x27   :  { %p1100_p3 = scmp.lt.u32.totalorder %s1096_s25, %s1228_s3 }
  0x29   :  { %p1102_p4 = pnand %p1100_p3, %p1097_p2 }
  0x2b   :  { %1105 = shalt.err (!%p1102_p4)
}
  0x2c   :  { %s1106_s7 = scalar_lea.vmem %s44_s22, 1024  ;;  %p1111_p6 = scmp.lt.s32.totalorder %s44_s22, %s44_s22 }
  0x2d   :  { %p1107_p5 = scmp.ne.s32.totalorder %s44_s22, %s1106_s7  ;;  %p1112_p7 = scmp.lt.s32.totalorder %s1106_s7, %s1106_s7 }
  0x2f   :  { %p1113_p8 = por %p1112_p7, %p1111_p6 }
  0x31   :  { %p1114_p9 = pnand %p1113_p8, %p1107_p5 }
  0x33   :  { %1117 = shalt.err (!%p1114_p9)
}
  0x34   :  { %49 = dma.hbm_to_vmem [thread:$0]  %s1228_s3, 1024, %s44_s22, [#allocation5], %s1123_s28, %s1123_s28, %s1124_s29  }
  0x35   :  { %1118 = dma.done.wait [#allocation3], 1792  }
  0x36   :  { %1119 = vsyncadd [#allocation3], 4294965504 }
  0x37   :  { %1120 = dma.done.wait [#allocation5], 7296  }
  0x38   :  { %1121 = vsyncadd [#allocation5], 4294960000  ;;  %v983_v0 = vld [vmem:[#allocation4 + $0x40] sm:$0xff]   ;;  %v987_v4 = vld [vmem:[#allocation4 + $0x48] sm:$0xff]   ;;  %v1129_v43 = vmov 0.0   ;;  %vm1130_vm0 = vmmov 0  }
  0x39   :  { %v984_v1 = vld [vmem:[#allocation4] sm:$0xff]   ;;  %871 = vmatprep.subr.bf16.mxu0 %v983_v0  ;;  %v988_v5 = vld [vmem:[#allocation4 + $0x8] sm:$0xff]   ;;  %v991_v8 = vld [vmem:[#allocation4 + $0x50] sm:$0xff]   ;;  %vm483_vm1 = vcmask 130048  }
  0x3a   :  { %v985_v2 = vld [vmem:[#allocation4 + $0xc0] sm:$0xff]   ;;  %872 = vmatpush3.bf16.msra.mxu0 %v984_v1  ;;  %v989_v6 = vld [vmem:[#allocation4 + $0xc8] sm:$0xff]   ;;  %v992_v9 = vld [vmem:[#allocation4 + $0x10] sm:$0xff]  }
  0x3b   :  { %v986_v3 = vld [vmem:[#allocation4 + $0x80] sm:$0xff]   ;;  %893 = vmatprep.subr.bf16.mxu1 %v985_v2  ;;  %873 = vmatprep.subr.bf16.mxu0 %v987_v4  ;;  %v990_v7 = vld [vmem:[#allocation4 + $0x88] sm:$0xff]   ;;  %v993_v10 = vld [vmem:[#allocation4 + $0xd0] sm:$0xff]  }
  0x3c   :  { %894 = vmatpush3.bf16.msra.mxu1 %v986_v3  ;;  %v994_v11 = vld [vmem:[#allocation4 + $0x90] sm:$0xff]   ;;  %v995_v12 = vld [vmem:[#allocation4 + $0x58] sm:$0xff]   ;;  %v999_v16 = vld [vmem:[#allocation4 + $0x60] sm:$0xff]  }
  0x3d   :  { %895 = vmatprep.subr.bf16.mxu1 %v989_v6  ;;  %v996_v13 = vld [vmem:[#allocation4 + $0x18] sm:$0xff]   ;;  %v1000_v17 = vld [vmem:[#allocation4 + $0x20] sm:$0xff]   ;;  %v1003_v20 = vld [vmem:[#allocation4 + $0x68] sm:$0xff]  }
  0x3e   :  { %874 = vmatpush3.bf16.msra.mxu0 %v988_v5  ;;  %v997_v14 = vld [vmem:[#allocation4 + $0xd8] sm:$0xff]   ;;  %v1001_v18 = vld [vmem:[#allocation4 + $0xe0] sm:$0xff]   ;;  %v1004_v21 = vld [vmem:[#allocation4 + $0x28] sm:$0xff]  }
  0x3f   :  { %875 = vmatprep.subr.bf16.mxu0 %v991_v8  ;;  %v998_v15 = vld [vmem:[#allocation4 + $0x98] sm:$0xff]   ;;  %v1002_v19 = vld [vmem:[#allocation4 + $0xa0] sm:$0xff]   ;;  %v1005_v22 = vld [vmem:[#allocation4 + $0xe8] sm:$0xff]  }
  0x40   :  { %896 = vmatpush3.bf16.msra.mxu1 %v990_v7  ;;  %v1006_v23 = vld [vmem:[#allocation4 + $0xa8] sm:$0xff]   ;;  %v1007_v24 = vld [vmem:[#allocation4 + $0x70] sm:$0xff]   ;;  %v1011_v28 = vld [vmem:[#allocation4 + $0x78] sm:$0xff]  }
  0x41   :  { %897 = vmatprep.subr.bf16.mxu1 %v993_v10  ;;  %v1008_v25 = vld [vmem:[#allocation4 + $0x30] sm:$0xff]   ;;  %v1012_v29 = vld [vmem:[#allocation4 + $0x38] sm:$0xff]   ;;  %v70_v36 = vld [vmem:[#allocation2 + $0x38] sm:$0xff] }
  0x42   :  { %876 = vmatpush3.bf16.msra.mxu0 %v992_v9  ;;  %v1009_v26 = vld [vmem:[#allocation4 + $0xf0] sm:$0xff]   ;;  %v1013_v30 = vld [vmem:[#allocation4 + $0xf8] sm:$0xff]   ;;  %v1015_v38 = vld [vmem:[#allocation4 + $0x140] sm:$0xff]  }
  0x43   :  { %877 = vmatprep.subr.bf16.mxu0 %v995_v12  ;;  %v1010_v27 = vld [vmem:[#allocation4 + $0xb0] sm:$0xff]   ;;  %v64_v31 = vld [vmem:[#allocation2 + $0x8] sm:$0xff]  ;;  %v66_v39 = vld [vmem:[#allocation2 + $0x18] sm:$0xff] }
  0x44   :  { %898 = vmatpush3.bf16.msra.mxu1 %v994_v11  ;;  %v71_v32 = vld [vmem:[#allocation2 + $0x40] sm:$0xff]  ;;  %v1014_v34 = vld [vmem:[#allocation4 + $0xb8] sm:$0xff]   ;;  %v73_v40 = vld [vmem:[#allocation2 + $0x50] sm:$0xff] }
  0x45   :  { %899 = vmatprep.subr.bf16.mxu1 %v997_v14  ;;  %v78_v33 = vpack.c.bf16 %v71_v32, %v64_v31  ;;  %v63_v35 = vld [vmem:[#allocation2] sm:$0xff]  ;;  %v80_v41 = vpack.c.bf16 %v73_v40, %v66_v39  ;;  %v1016_v42 = vld [vmem:[#allocation4 + $0x100] sm:$0xff]   ;;  %v72_v45 = vld [vmem:[#allocation2 + $0x48] sm:$0xff] }
  0x46   :  { %878 = vmatpush3.bf16.msra.mxu0 %v996_v13  ;;  %v77_v37 = vpack.c.bf16 %v70_v36, %v63_v35  ;;  %v65_v44 = vld [vmem:[#allocation2 + $0x10] sm:$0xff]  ;;  %v1017_v47 = vld [vmem:[#allocation4 + $0x148] sm:$0xff]   ;;  %v1019_v49 = vld [vmem:[#allocation4 + $0x150] sm:$0xff]  }
  0x47   :  { %879 = vmatprep.subr.bf16.mxu0 %v999_v16  ;;  %519 = vmatprep.mubr.bf16.mxu0 %v78_v33  ;;  %v79_v46 = vpack.c.bf16 %v72_v45, %v65_v44  ;;  %v1018_v48 = vld [vmem:[#allocation4 + $0x108] sm:$0xff]   ;;  %v1020_v50 = vld [vmem:[#allocation4 + $0x110] sm:$0xff]   ;;  %v1021_v51 = vld [vmem:[#allocation4 + $0x158] sm:$0xff]  }
  0x48   :  { %900 = vmatpush3.bf16.msra.mxu1 %v998_v15  ;;  %560 = vmatprep.mubr.bf16.mxu1 %v80_v41  ;;  %v1022_v52 = vld [vmem:[#allocation4 + $0x118] sm:$0xff]   ;;  %v1023_v53 = vld [vmem:[#allocation4 + $0x160] sm:$0xff]   ;;  %v1025_v55 = vld [vmem:[#allocation4 + $0x168] sm:$0xff]  }
  0x49   :  { %901 = vmatprep.subr.bf16.mxu1 %v1001_v18  ;;  %v1024_v54 = vld [vmem:[#allocation4 + $0x120] sm:$0xff]   ;;  %v68_v57 = vld [vmem:[#allocation2 + $0x28] sm:$0xff]  ;;  %v1026_v58 = vld [vmem:[#allocation4 + $0x128] sm:$0xff]  }
  0x4a   :  { %880 = vmatpush3.bf16.msra.mxu0 %v1000_v17  ;;  %v1031_v56 = vld [vmem:[#allocation4 + $0x180] sm:$0xff]   ;;  %v1027_v59 = vld [vmem:[#allocation4 + $0x170] sm:$0xff]   ;;  %v76_v63 = vld [vmem:[#allocation2 + $0x68] sm:$0xff] }
  0x4b   :  { %881 = vmatprep.subr.bf16.mxu0 %v1003_v20  ;;  %v75_v60 = vld [vmem:[#allocation2 + $0x60] sm:$0xff]  ;;  %v69_v62 = vld [vmem:[#allocation2 + $0x30] sm:$0xff]  ;;  %v1029_v2 = vld [vmem:[#allocation4 + $0x178] sm:$0xff]  }
  0x4c   :  { %902 = vmatpush3.bf16.msra.mxu1 %v1002_v19  ;;  %v82_v61 = vpack.c.bf16 %v75_v60, %v68_v57  ;;  %v83_v0 = vpack.c.bf16 %v76_v63, %v69_v62  ;;  %v1028_v1 = vld [vmem:[#allocation4 + $0x130] sm:$0xff]   ;;  %v1030_v3 = vld [vmem:[#allocation4 + $0x138] sm:$0xff]   ;;  %v74_v5 = vld [vmem:[#allocation2 + $0x58] sm:$0xff] }
  0x4d   :  { %903 = vmatprep.subr.bf16.mxu1 %v1005_v22  ;;  %v67_v4 = vld [vmem:[#allocation2 + $0x20] sm:$0xff]  ;;  %v1032_v7 = vld [vmem:[#allocation6] sm:$0xff]   ;;  %v1034_v9 = vld [vmem:[#allocation6 + $0x10] sm:$0xff]  }
  0x4e   :  { %882 = vmatpush3.bf16.msra.mxu0 %v1004_v21  ;;  %v81_v6 = vpack.c.bf16 %v74_v5, %v67_v4  ;;  %v1033_v8 = vld [vmem:[#allocation6 + $0x8] sm:$0xff]   ;;  %v1035_v10 = vld [vmem:[#allocation6 + $0x18] sm:$0xff]   ;;  %v1036_v11 = vld [vmem:[#allocation6 + $0x20] sm:$0xff]  }
  0x4f   :  { %883 = vmatprep.subr.bf16.mxu0 %v1007_v24  ;;  %v1037_v12 = vld [vmem:[#allocation6 + $0x28] sm:$0xff]   ;;  %v1038_v13 = vld [vmem:[#allocation6 + $0x30] sm:$0xff]   ;;  %v1039_v14 = vld [vmem:[#allocation6 + $0x38] sm:$0xff]  }
  0x50   :  { %904 = vmatpush3.bf16.msra.mxu1 %v1006_v23  ;;  %v799_v16 = vld [vmem:[%s1227_s2] ss:$0 sm:$0xff] }
  0x51   :  { %905 = vmatprep.subr.bf16.mxu1 %v1009_v26 }
  0x52   :  { %884 = vmatpush3.bf16.msra.mxu0 %v1008_v25 }
  0x53   :  { %885 = vmatprep.subr.bf16.mxu0 %v1011_v28 }
  0x54   :  { %906 = vmatpush3.bf16.msra.mxu1 %v1010_v27 }
  0x55   :  { %907 = vmatprep.subr.bf16.mxu1 %v1013_v30 }
  0x56   :  { %886 = vmatpush3.bf16.msra.mxu0 %v1012_v29 }
  0x57   :  { %915 = vmatprep.subr.bf16.mxu0 %v1015_v38 }
  0x58   :  { %908 = vmatpush3.bf16.msra.mxu1 %v1014_v34 }
  0x59   :  { %948 = vmatprep.subr.bf16.mxu1 %v1129_v43  ;;  %520 = vmatmul.mubr.bf16.vlgmr.msra.gmra.mrb[0].mxu0 %v77_v37 }
  0x5a   :  { %916 = vmatpush3.bf16.msra.mxu0 %v1016_v42  ;;  %601 = vmatprep.mubr.bf16.mxu0 %v82_v61 }
  0x5b   :  { %561 = vmatmul.mubr.bf16.vlgmr.msra.gmra.mrb[0].mxu1 %v79_v46  ;;  %917 = vmatprep.subr.bf16.mxu0 %v1017_v47 }
  0x5c   :  { %950 = vmatprep.mubr.msk.bf16.mxu1 %vm1130_vm0, %v1129_v43  ;;  %949 = vmatpush3.bf16.msra.mxu1 %v1031_v56 }
  0x5d   :  { %954 = vmatprep.subr.bf16.mxu1 %v1129_v43 }
  0x5e   :  { %918 = vmatpush3.bf16.msra.mxu0 %v1018_v48 }
  0x5f   :  { %919 = vmatprep.subr.bf16.mxu0 %v1019_v49 }
  0x62   :  { %920 = vmatpush3.bf16.msra.mxu0 %v1020_v50 }
  0x63   :  { %921 = vmatprep.subr.bf16.mxu0 %v1021_v51  ;;  %951 = vmatmul.mubr.msk.bf16.vlgmr.msra.gmra.mrb[4].mxu1 %vm483_vm1, %v83_v0 }
  0x64   :  { %970 = vmatprep.mubr.msk.bf16.mxu1 %vm1130_vm0, %v1129_v43  ;;  %955 = vmatpush3.bf16.msra.mxu1 %v1032_v7 }
  0x65   :  { %956 = vmatprep.subr.bf16.mxu1 %v1129_v43 }
  0x66   :  { %922 = vmatpush3.bf16.msra.mxu0 %v1022_v52  ;;  %v851_v52 = vld [vmem:[%s1229_s4] ss:$0 sm:$0xff] }
  0x67   :  { %923 = vmatprep.subr.bf16.mxu0 %v1023_v53 }
  0x68   :  { %957 = vmatpush3.bf16.msra.mxu1 %v1033_v8 }
  0x69   :  { %958 = vmatprep.subr.bf16.mxu1 %v1129_v43 }
  0x6a   :  { %924 = vmatpush3.bf16.msra.mxu0 %v1024_v54 }
  0x6b   :  { %925 = vmatprep.subr.bf16.mxu0 %v1025_v55 }
  0x6c   :  { %959 = vmatpush3.bf16.msra.mxu1 %v1034_v9 }
  0x6d   :  { %960 = vmatprep.subr.bf16.mxu1 %v1129_v43 }
  0x6e   :  { %926 = vmatpush3.bf16.msra.mxu0 %v1026_v58 }
  0x6f   :  { %927 = vmatprep.subr.bf16.mxu0 %v1027_v59 }
  0x70   :  { %961 = vmatpush3.bf16.msra.mxu1 %v1035_v10 }
  0x71   :  { %962 = vmatprep.subr.bf16.mxu1 %v1129_v43 }
  0x72   :  { %928 = vmatpush3.bf16.msra.mxu0 %v1028_v1 }
  0x73   :  { %929 = vmatprep.subr.bf16.mxu0 %v1029_v2 }
  0x74   :  { %963 = vmatpush3.bf16.msra.mxu1 %v1036_v11 }
  0x75   :  { %964 = vmatprep.subr.bf16.mxu1 %v1129_v43 }
  0x76   :  { %930 = vmatpush3.bf16.msra.mxu0 %v1030_v3 }
  0x78   :  { %965 = vmatpush3.bf16.msra.mxu1 %v1037_v12 }
  0x79   :  { %602 = vmatmul.mubr.bf16.vlgmr.msra.gmra.mrb[4].mxu0 %v81_v6  ;;  %966 = vmatprep.subr.bf16.mxu1 %v1129_v43 }
  0x7c   :  { %967 = vmatpush3.bf16.msra.mxu1 %v1038_v13 }
  0x7d   :  { %968 = vmatprep.subr.bf16.mxu1 %v1129_v43 }
  0x80   :  { %969 = vmatpush3.bf16.msra.mxu1 %v1039_v14 }
 0x12c   :  { %v887_v15 = vpop.f32.mrb[0].mxu0 }
 0x12d   :  { %v888_v17 = vpop.f32.mrb[1].mxu0 }
 0x12e   :  { %v889_v18 = vadd.f32 %v888_v17, %v887_v15  ;;  %v890_v19 = vpop.f32.mrb[2].mxu0  ;;  %v909_v20 = vpop.f32.mrb[0].mxu1 }
 0x12f   :  { %v891_v21 = vpop.f32.mrb[3].mxu0  ;;  %v910_v24 = vpop.f32.mrb[1].mxu1 }
 0x130   :  { %v522_v22 = vadd.f32 %v889_v18, %v799_v16  ;;  %v892_v23 = vadd.f32 %v891_v21, %v890_v19  ;;  %v911_v25 = vadd.f32 %v910_v24, %v909_v20  ;;  %v912_v26 = vpop.f32.mrb[2].mxu1 }
 0x131   :  { %v913_v28 = vpop.f32.mrb[3].mxu1 }
 0x132   :  { %v525_v27 = vadd.f32 %v892_v23, %v799_v16  ;;  %v563_v29 = vadd.f32 %v911_v25, %v522_v22  ;;  %v914_v30 = vadd.f32 %v913_v28, %v912_v26 }
 0x134   :  { %v566_v31 = vadd.f32 %v914_v30, %v525_v27 }
 0x136   :  { %v644_v32 = vpop.f32.mrb[4].mxu1 }
 0x137   :  { %v952_v33 = vpop.f32.mrb[5].mxu1 }
 0x138   :  { %v647_v34 = vpop.f32.mrb[6].mxu1 }
 0x139   :  { %v953_v35 = vpop.f32.mrb[7].mxu1 }
 0x14c   :  { %v931_v36 = vpop.f32.mrb[4].mxu0 }
 0x14d   :  { %v932_v37 = vpop.f32.mrb[5].mxu0 }
 0x14e   :  { %v933_v38 = vadd.f32 %v932_v37, %v931_v36  ;;  %v934_v39 = vpop.f32.mrb[6].mxu0 }
 0x14f   :  { %v935_v40 = vpop.f32.mrb[7].mxu0 }
 0x150   :  { %v604_v41 = vadd.f32 %v933_v38, %v563_v29  ;;  %v936_v42 = vadd.f32 %v935_v40, %v934_v39 }
 0x152   :  { %v645_v43 = vadd.f32 %v644_v32, %v604_v41  ;;  %v607_v44 = vadd.f32 %v936_v42, %v566_v31 }
 0x154   :  { %v648_v45 = vadd.f32 %v647_v34, %v607_v44 }
 0x156   :  { %v651_v46 = vpack.c.bf16 %v648_v45, %v645_v43 }
 0x158   :  { %v850_v47 = vmul.bf16 3216621497, %v651_v46 }
 0x15a   :  { %1040 = vpow.bf16 %v850_v47 }
 0x165   :  { %v1041_v48 = vpop.eup %1040 }
 0x166   :  { %v656_v49 = vadd.bf16 1065369472, %v1041_v48 }
 0x168   :  { %1042 = vrcp.bf16 %v656_v49 }
 0x173   :  { %v1043_v50 = vpop.eup %1042 }
 0x174   :  { %v658_v51 = vmul.bf16 1065369472, %v1043_v50 }
 0x176   :  { %971 = vmatmul.mubr.bf16.vlgmr.msra.gmra.mrb[8].mxu1 %v658_v51 }
 0x249   :  { %v764_v53 = vpop.f32.mrb[8].mxu1 }
 0x24a   :  { %v765_v54 = vadd.f32 %v851_v52, %v764_v53  ;;  %v972_v55 = vpop.f32.mrb[9].mxu1 }
 0x24b   :  { %v767_v56 = vpop.f32.mrb[10].mxu1 }
 0x24c   :  { %v860_v57 = vmul.f32 -1.442695, %v765_v54  ;;  %v768_v58 = vadd.f32 %v851_v52, %v767_v56  ;;  %v973_v59 = vpop.f32.mrb[11].mxu1 }
 0x24e   :  { %1044 = vpow2.f32 %v860_v57  ;;  %v861_v60 = vmul.f32 -1.442695, %v768_v58 }
 0x250   :  { %1046 = vpow2.f32 %v861_v60 }
 0x258   :  { %v1045_v61 = vpop.eup %1044 }
 0x259   :  { %v777_v62 = vadd.f32 1.0, %v1045_v61 }
 0x25a   :  { %v1047_v63 = vpop.eup %1046 }
 0x25b   :  { %v778_v0 = vadd.f32 1.0, %v1047_v63  ;;  %1048 = vrcp.f32 %v777_v62 }
 0x25d   :  { %1050 = vrcp.f32 %v778_v0 }
 0x265   :  { %v1049_v1 = vpop.eup %1048 }
 0x267   :  { %v1051_v2 = vpop.eup %1050 }
 0x268   :  { %v869_v3 = vpack.c.bf16 %v1051_v2, %v1049_v1 }
 0x26a   :  { %870 = vst [vmem:[%s1230_s5] sm:$0xff] %v869_v3  }
 0x26b   :  { %797 = vsyncpa [#allocation3], 1 }
 0x26c   :  { %798 = vsyncpa [#allocation5], 1 }

</bundles_post_ra>
